<compile_context>
chip_gen: v5e
topology: v5e:2x2
jax: 0.10.0
libtpu: 0.0.40
codegen_flags: <defaults>
</compile_context>

<pallas_src>
import functools

import jax
import jax.numpy as jnp
from jax.experimental import pallas as pl
from jax.experimental.pallas import tpu as pltpu


def _round_up(x, m):
    return (x + m - 1) // m * m


def _vmem_limit_bytes():
    """Generation-aware scoped-VMEM request (leave headroom on v7x)."""
    cap = 64 * 1024 * 1024
    try:
        info = pltpu.get_tpu_info()
        cap = int(getattr(info, "vmem_capacity_bytes", cap))
    except Exception:
        pass
    if cap >= 128 * 1024 * 1024:
        return 100 * 1024 * 1024          # v5e / v6e: far above the 16/32 MiB default
    return int(cap * 0.85)                # v7x: stay under the 64 MiB physical ceiling


def _pick_h_chunk(Hp, target):
    """Largest multiple of 128 that divides Hp and is <= target (min 128)."""
    target = max(128, min(int(target), Hp))
    best = 128
    c = 128
    while c <= target:
        if Hp % c == 0:
            best = c
        c += 128
    return best


def proj_layer_kernel(x_ref, w1_ref, b1_ref, w2_ref, b2_ref, g_ref, beta_ref,
                      o_ref, xn_ref, acc_ref, *, eps, inv_d):
    """Row tile (tm, Dp); grid axis 1 streams the hidden dim Hp in th chunks.

    k == 0    : LayerNorm -> xn scratch (compute dtype), zero the accumulator.
    every k   : h = xn @ W1t[:, k*th:..]; a = QuickGELU(h); acc += a @ W2t[k*th:.., :].
    k == last : out = acc + b2 + x   (dropout(eval) == identity; residual re-reads x_ref).
    """
    k = pl.program_id(1)
    nk = pl.num_programs(1)

    @pl.when(k == 0)
    def _ln_and_init():
        x = x_ref[...].astype(jnp.float32)
        # Sum-based moments over the true feature count: zero-padded lanes
        # contribute nothing; divide by the real D via inv_d.
        s1 = jnp.sum(x, axis=-1, keepdims=True)
        s2 = jnp.sum(x * x, axis=-1, keepdims=True)
        mean = s1 * inv_d
        var = jnp.maximum(s2 * inv_d - mean * mean, 0.0)   # clamp f32 rounding
        inv = jax.lax.rsqrt(var + eps)
        xn = (x - mean) * inv * g_ref[...].astype(jnp.float32) \
             + beta_ref[...].astype(jnp.float32)
        xn_ref[...] = xn.astype(xn_ref.dtype)
        acc_ref[...] = jnp.zeros_like(acc_ref)

    # dense1 chunk: (tm, Dp) @ (Dp, th) in the parameter dtype (bf16 MXU fast
    # path when params are bf16), f32 accumulation.
    h = jnp.dot(xn_ref[...], w1_ref[...], preferred_element_type=jnp.float32)
    h = h + b1_ref[...].astype(jnp.float32)

    # QuickGELU: h * sigmoid(1.702 * h)  (sigmoid -> EUP slot).
    a = h * jax.nn.sigmoid(1.702 * h)

    # dense2 chunk: accumulate (tm, th) @ (th, Dp) into the f32 accumulator.
    acc_ref[...] += jnp.dot(a.astype(w2_ref.dtype), w2_ref[...],
                            preferred_element_type=jnp.float32)

    @pl.when(k == nk - 1)
    def _store():
        y = acc_ref[...] + b2_ref[...].astype(jnp.float32) \
            + x_ref[...].astype(jnp.float32)                 # residual
        o_ref[...] = y.astype(o_ref.dtype)


def prepare_proj_params(params, compute_dtype=None):
    """One-time prep: transpose + lane-pad weights, pad biases/LN params.

    Call ONCE and reuse the result across proj_layer calls; this hoists the
    per-call transpose/pad HBM traffic out of the hot path.
    """
    w1 = params["w1"]          # (H, D)
    w2 = params["w2"]          # (D, H)
    H, D = w1.shape
    cdt = jnp.dtype(compute_dtype) if compute_dtype is not None else jnp.dtype(w1.dtype)
    Dp = _round_up(D, 128)
    Hp = _round_up(H, 128)
    f32 = jnp.float32
    return {
        "w1t": jnp.zeros((Dp, Hp), cdt).at[:D, :H].set(w1.T.astype(cdt)),
        "w2t": jnp.zeros((Hp, Dp), cdt).at[:H, :D].set(w2.T.astype(cdt)),
        "b1": jnp.zeros((1, Hp), f32).at[0, :H].set(params["b1"].astype(f32)),
        "b2": jnp.zeros((1, Dp), f32).at[0, :D].set(params["b2"].astype(f32)),
        "gamma": jnp.zeros((1, Dp), f32).at[0, :D].set(params["gamma"].astype(f32)),
        "beta": jnp.zeros((1, Dp), f32).at[0, :D].set(params["beta"].astype(f32)),
        "D": D, "H": H, "Dp": Dp, "Hp": Hp, "cdt": cdt,
    }


def proj_layer(x, params, *, eps=1e-12, tm=256, h_chunk=None):
    """x: [B, S, D].

    `params` is either the raw dict (w1 (H,D), b1, w2 (D,H), b2, gamma, beta)
    or, preferably, the cached result of prepare_proj_params.

    tm=256 fills the 256-wide MXU on v6e/v7x; on v6e with large N, passing
    tm=512 halves the number of grid steps for another ~5-10%.
    """
    prep = params if "w1t" in params else prepare_proj_params(params)
    B, S, D = x.shape
    assert D == prep["D"], f"feature dim mismatch: {D} vs {prep['D']}"
    Dp, Hp, cdt = prep["Dp"], prep["Hp"], prep["cdt"]
    N = B * S

    vmem_limit = _vmem_limit_bytes()

    # Row tile rounded to the dtype's sublane packing (f32:8, bf16:16, int8:32).
    sub = {4: 8, 2: 16, 1: 32}.get(jnp.dtype(x.dtype).itemsize, 8)
    tm_eff = min(_round_up(tm, sub), _round_up(N, sub))
    Np = _round_up(N, tm_eff)

    # Hidden-dim chunk: keep both weights fully resident when they comfortably
    # fit the scoped VMEM budget (v5e/v6e, small models); otherwise stream Hp
    # in th-wide chunks (v7x / big D,H) with an f32 VMEM accumulator.
    weight_bytes = 2 * Dp * Hp * jnp.dtype(cdt).itemsize
    if h_chunk is not None:
        th = _pick_h_chunk(Hp, h_chunk)
    elif weight_bytes <= vmem_limit // 2:
        th = Hp
    else:
        th = _pick_h_chunk(Hp, 512)
    nk = Hp // th

    # Skip the pad copy (and the output slice) when rows/lanes are aligned.
    needs_pad = (Np != N) or (Dp != D)
    if needs_pad:
        x2 = jnp.zeros((Np, Dp), x.dtype).at[:N, :D].set(x.reshape(N, D))
    else:
        x2 = x.reshape(N, D)

    kernel = functools.partial(proj_layer_kernel, eps=eps, inv_d=1.0 / D)
    can_single_buffer = hasattr(pl, "Buffered")

    def build(single_buffer_invariants):
        def inv_spec(shape, imap):
            if single_buffer_invariants:
                return pl.BlockSpec(shape, imap, pipeline_mode=pl.Buffered(1))
            return pl.BlockSpec(shape, imap)

        # Weight chunks are grid-invariant only when not streaming (nk == 1);
        # when streaming, keep default double-buffering so the next H chunk's
        # DMA overlaps the current matmuls.
        w_spec = inv_spec if nk == 1 else pl.BlockSpec

        return pl.pallas_call(
            kernel,
            out_shape=jax.ShapeDtypeStruct((Np, Dp), x.dtype),
            grid_spec=pltpu.PrefetchScalarGridSpec(
                num_scalar_prefetch=0,
                grid=(Np // tm_eff, nk),
                in_specs=[
                    pl.BlockSpec((tm_eff, Dp), lambda i, k: (i, 0)),  # x row tile
                    w_spec((Dp, th), lambda i, k: (0, k)),            # W1^T chunk
                    w_spec((1, th), lambda i, k: (0, k)),             # b1 chunk
                    w_spec((th, Dp), lambda i, k: (k, 0)),            # W2^T chunk
                    inv_spec((1, Dp), lambda i, k: (0, 0)),           # b2
                    inv_spec((1, Dp), lambda i, k: (0, 0)),           # gamma
                    inv_spec((1, Dp), lambda i, k: (0, 0)),           # beta
                ],
                out_specs=pl.BlockSpec((tm_eff, Dp), lambda i, k: (i, 0)),
                scratch_shapes=[
                    pltpu.VMEM((tm_eff, Dp), cdt),          # LayerNorm output
                    pltpu.VMEM((tm_eff, Dp), jnp.float32),  # dense2 accumulator
                ],
            ),
            compiler_params=pltpu.CompilerParams(
                dimension_semantics=("parallel", "arbitrary"),
                vmem_limit_bytes=vmem_limit,
            ),
        )

    args = (x2, prep["w1t"], prep["b1"], prep["w2t"], prep["b2"],
            prep["gamma"], prep["beta"])
    if can_single_buffer:
        try:
            out = build(True)(*args)
        except Exception:
            # Fallback if this jax build rejects pl.Buffered(1) on pallas_call specs.
            out = build(False)(*args)
    else:
        out = build(False)(*args)

    if needs_pad:
        out = out[:N, :D]
    return out.reshape(B, S, D)


def reference(x, params, eps=1e-12):
    """Pure-JAX reference mirroring the PyTorch forward (eval mode)."""
    x_in = x
    mean = jnp.mean(x, axis=-1, keepdims=True)
    var = jnp.mean((x - mean) ** 2, axis=-1, keepdims=True)
    xn = (x - mean) / jnp.sqrt(var + eps) * params["gamma"] + params["beta"]
    h = xn @ params["w1"].T + params["b1"]
    a = h * jax.nn.sigmoid(1.702 * h)
    y = a @ params["w2"].T + params["b2"]
    return y + x_in


def _make_params(key, D, H, dtype):
    k1, k2, k3, k4 = jax.random.split(key, 4)
    return {
        "w1": (jax.random.normal(k1, (H, D), jnp.float32) * 0.05).astype(dtype),
        "b1": (jax.random.normal(k2, (H,), jnp.float32) * 0.01).astype(dtype),
        "w2": (jax.random.normal(k3, (D, H), jnp.float32) * 0.05).astype(dtype),
        "b2": (jax.random.normal(k4, (D,), jnp.float32) * 0.01).astype(dtype),
        "gamma": jnp.ones((D,), dtype),
        "beta": jnp.zeros((D,), dtype),
    }


if __name__ == "__main__":
    key = jax.random.PRNGKey(0)
    kx1, kp1, kx2, kp2, kx3, kp3 = jax.random.split(key, 6)

    # --- Case 1: f32, deliberately ragged/tiny shapes (exercises the row +
    #     lane padding path).  Module eps default is 1e-12 (ProjLayer.__init__).
    B, S, D, H = 2, 7, 32, 64
    x = jax.random.normal(kx1, (B, S, D), jnp.float32)
    params = _make_params(kp1, D, H, jnp.float32)
    prep = prepare_proj_params(params)               # one-time prep, reused
    out = jax.block_until_ready(proj_layer(x, prep))
    ref = reference(x, params)
    assert out.shape == (B, S, D)
    err = float(jnp.max(jnp.abs(out - ref)))
    assert jnp.allclose(out, ref, atol=1e-4, rtol=1e-4), f"f32 max err {err}"

    # --- Case 2: bf16 params/activations, lane-aligned shapes -> pad-free
    #     fast path, resident single-buffered weights, 2 row tiles so the
    #     "parallel" axis gives both v7x TensorCores work.
    B2, S2, D2, H2 = 2, 256, 128, 256
    x_bf = jax.random.normal(kx2, (B2, S2, D2), jnp.float32).astype(jnp.bfloat16)
    params_bf = _make_params(kp2, D2, H2, jnp.bfloat16)
    prep_bf = prepare_proj_params(params_bf)
    out_bf = jax.block_until_ready(proj_layer(x_bf, prep_bf))
    ref_bf = reference(x_bf.astype(jnp.float32),
                       {k: v.astype(jnp.float32) for k, v in params_bf.items()})
    assert out_bf.shape == (B2, S2, D2)
    err_bf = float(jnp.max(jnp.abs(out_bf.astype(jnp.float32) - ref_bf)))
    assert jnp.allclose(out_bf.astype(jnp.float32), ref_bf, atol=5e-2, rtol=5e-2), \
        f"bf16 max err {err_bf}"

    # --- Case 3: f32, forced hidden-dim streaming (h_chunk=128 -> 3 H chunks)
    #     -> exercises the k-axis accumulator path used on v7x for big D/H.
    B3, S3, D3, H3 = 2, 64, 128, 384
    x3 = jax.random.normal(kx3, (B3, S3, D3), jnp.float32)
    params3 = _make_params(kp3, D3, H3, jnp.float32)
    out3 = jax.block_until_ready(
        proj_layer(x3, prepare_proj_params(params3), h_chunk=128))
    ref3 = reference(x3, params3)
    assert out3.shape == (B3, S3, D3)
    err3 = float(jnp.max(jnp.abs(out3 - ref3)))
    assert jnp.allclose(out3, ref3, atol=5e-4, rtol=5e-4), f"stream max err {err3}"

    print("KERNEL_OK")
</pallas_src>

<mosaic_0001>
module attributes {stable_mosaic.version = 11 : i64} {
  func.func @proj_layer_kernel(%arg0: i32, %arg1: i32, %arg2: memref<16x128xf32, #tpu.memory_space<vmem>>, %arg3: memref<128x128xf32, #tpu.memory_space<vmem>>, %arg4: memref<1x128xf32, #tpu.memory_space<vmem>>, %arg5: memref<128x128xf32, #tpu.memory_space<vmem>>, %arg6: memref<1x128xf32, #tpu.memory_space<vmem>>, %arg7: memref<1x128xf32, #tpu.memory_space<vmem>>, %arg8: memref<1x128xf32, #tpu.memory_space<vmem>>, %arg9: memref<16x128xf32, #tpu.memory_space<vmem>>, %arg10: memref<16x128xf32, #tpu.memory_space<vmem>>, %arg11: memref<16x128xf32, #tpu.memory_space<vmem>>) attributes {dimension_semantics = [#tpu.dimension_semantics<parallel>, #tpu.dimension_semantics<arbitrary>], iteration_bounds = array<i64: 1, 1>, scalar_prefetch = 0 : i64, scratch_operands = 2 : i64, tpu.core_type = #tpu.core_type<tc>, window_params = [{transform_indices = @transform_0, window_bounds = array<i64: 16, 128>}, {pipeline_mode = #tpu.pipeline_mode<synchronous>, transform_indices = @transform_1, window_bounds = array<i64: 128, 128>}, {pipeline_mode = #tpu.pipeline_mode<synchronous>, transform_indices = @transform_2, window_bounds = array<i64: 1, 128>}, {pipeline_mode = #tpu.pipeline_mode<synchronous>, transform_indices = @transform_3, window_bounds = array<i64: 128, 128>}, {pipeline_mode = #tpu.pipeline_mode<synchronous>, transform_indices = @transform_4, window_bounds = array<i64: 1, 128>}, {pipeline_mode = #tpu.pipeline_mode<synchronous>, transform_indices = @transform_5, window_bounds = array<i64: 1, 128>}, {pipeline_mode = #tpu.pipeline_mode<synchronous>, transform_indices = @transform_6, window_bounds = array<i64: 1, 128>}, {transform_indices = @transform_7, window_bounds = array<i64: 16, 128>}]} {
    %c0_i32 = arith.constant 0 : i32
    %0 = arith.cmpi eq, %arg1, %c0_i32 : i32
    %1 = arith.extui %0 : i1 to i32
    %c0_i32_0 = arith.constant 0 : i32
    %2 = arith.cmpi ne, %1, %c0_i32_0 : i32
    scf.if %2 {
      %c0_17 = arith.constant 0 : index
      %c0_18 = arith.constant 0 : index
      %25 = vector.load %arg2[%c0_17, %c0_18] : memref<16x128xf32, #tpu.memory_space<vmem>>, vector<16x128xf32>
      %cst_19 = arith.constant dense<0.000000e+00> : vector<16xf32>
      %26 = vector.multi_reduction <add>, %25, %cst_19 [1] : vector<16x128xf32> to vector<16xf32>
      %27 = vector.shape_cast %26 : vector<16xf32> to vector<16x1xf32>
      %28 = arith.mulf %25, %25 : vector<16x128xf32>
      %cst_20 = arith.constant dense<0.000000e+00> : vector<16xf32>
      %29 = vector.multi_reduction <add>, %28, %cst_20 [1] : vector<16x128xf32> to vector<16xf32>
      %30 = vector.shape_cast %29 : vector<16xf32> to vector<16x1xf32>
      %cst_21 = arith.constant 3.125000e-02 : f32
      %31 = vector.broadcast %cst_21 : f32 to vector<16x1xf32>
      %32 = arith.mulf %27, %31 : vector<16x1xf32>
      %cst_22 = arith.constant 3.125000e-02 : f32
      %33 = vector.broadcast %cst_22 : f32 to vector<16x1xf32>
      %34 = arith.mulf %30, %33 : vector<16x1xf32>
      %35 = arith.mulf %32, %32 : vector<16x1xf32>
      %36 = arith.subf %34, %35 : vector<16x1xf32>
      %cst_23 = arith.constant 0.000000e+00 : f32
      %37 = vector.broadcast %cst_23 : f32 to vector<16x1xf32>
      %38 = arith.maximumf %36, %37 : vector<16x1xf32>
      %cst_24 = arith.constant 9.99999996E-13 : f32
      %39 = vector.broadcast %cst_24 : f32 to vector<16x1xf32>
      %40 = arith.addf %38, %39 : vector<16x1xf32>
      %41 = math.rsqrt %40 : vector<16x1xf32>
      %42 = vector.broadcast %32 : vector<16x1xf32> to vector<16x128xf32>
      %43 = arith.subf %25, %42 : vector<16x128xf32>
      %44 = vector.broadcast %41 : vector<16x1xf32> to vector<16x128xf32>
      %45 = arith.mulf %43, %44 : vector<16x128xf32>
      %c0_25 = arith.constant 0 : index
      %c0_26 = arith.constant 0 : index
      %46 = vector.load %arg7[%c0_25, %c0_26] : memref<1x128xf32, #tpu.memory_space<vmem>>, vector<1x128xf32>
      %47 = vector.broadcast %46 : vector<1x128xf32> to vector<16x128xf32>
      %48 = arith.mulf %45, %47 : vector<16x128xf32>
      %c0_27 = arith.constant 0 : index
      %c0_28 = arith.constant 0 : index
      %49 = vector.load %arg8[%c0_27, %c0_28] : memref<1x128xf32, #tpu.memory_space<vmem>>, vector<1x128xf32>
      %50 = vector.broadcast %49 : vector<1x128xf32> to vector<16x128xf32>
      %51 = arith.addf %48, %50 : vector<16x128xf32>
      %c0_29 = arith.constant 0 : index
      %c0_30 = arith.constant 0 : index
      %52 = vector.load %arg10[%c0_29, %c0_30] : memref<16x128xf32, #tpu.memory_space<vmem>>, vector<16x128xf32>
      tpu.vector_store %arg10[%c0_29, %c0_30], %51 {strides = array<i32>} : memref<16x128xf32, #tpu.memory_space<vmem>>, vector<16x128xf32>,
      %cst_31 = arith.constant 0.000000e+00 : f32
      %53 = vector.broadcast %cst_31 : f32 to vector<16x128xf32>
      %c0_32 = arith.constant 0 : index
      %c0_33 = arith.constant 0 : index
      %54 = vector.load %arg11[%c0_32, %c0_33] : memref<16x128xf32, #tpu.memory_space<vmem>>, vector<16x128xf32>
      tpu.vector_store %arg11[%c0_32, %c0_33], %53 {strides = array<i32>} : memref<16x128xf32, #tpu.memory_space<vmem>>, vector<16x128xf32>,
    } else {
    }
    %c0 = arith.constant 0 : index
    %c0_1 = arith.constant 0 : index
    %3 = vector.load %arg10[%c0, %c0_1] : memref<16x128xf32, #tpu.memory_space<vmem>>, vector<16x128xf32>
    %c0_2 = arith.constant 0 : index
    %c0_3 = arith.constant 0 : index
    %4 = vector.load %arg3[%c0_2, %c0_3] : memref<128x128xf32, #tpu.memory_space<vmem>>, vector<128x128xf32>
    %cst = arith.constant dense<0.000000e+00> : vector<16x128xf32>
    %5 = tpu.matmul %3, %4, %cst {dimension_numbers = #tpu.dot_dimension_numbers<[1], [0], [0], [1], [0, 0, 1, 1], [], []>} : vector<16x128xf32>, vector<128x128xf32>, vector<16x128xf32> -> vector<16x128xf32>
    %c0_4 = arith.constant 0 : index
    %c0_5 = arith.constant 0 : index
    %6 = vector.load %arg4[%c0_4, %c0_5] : memref<1x128xf32, #tpu.memory_space<vmem>>, vector<1x128xf32>
    %7 = vector.broadcast %6 : vector<1x128xf32> to vector<16x128xf32>
    %8 = arith.addf %5, %7 : vector<16x128xf32>
    %cst_6 = arith.constant 1.702000e+00 : f32
    %9 = vector.broadcast %cst_6 : f32 to vector<16x128xf32>
    %10 = arith.mulf %9, %8 : vector<16x128xf32>
    %11 = arith.negf %10 : vector<16x128xf32>
    %12 = math.exp %11 : vector<16x128xf32>
    %cst_7 = arith.constant 1.000000e+00 : f32
    %13 = vector.broadcast %cst_7 : f32 to vector<16x128xf32>
    %14 = arith.addf %13, %12 : vector<16x128xf32>
    %15 = arith.divf %13, %14 : vector<16x128xf32>
    %16 = arith.mulf %8, %15 : vector<16x128xf32>
    %c0_8 = arith.constant 0 : index
    %c0_9 = arith.constant 0 : index
    %17 = vector.load %arg11[%c0_8, %c0_9] : memref<16x128xf32, #tpu.memory_space<vmem>>, vector<16x128xf32>
    %c0_10 = arith.constant 0 : index
    %c0_11 = arith.constant 0 : index
    %18 = vector.load %arg5[%c0_10, %c0_11] : memref<128x128xf32, #tpu.memory_space<vmem>>, vector<128x128xf32>
    %cst_12 = arith.constant dense<0.000000e+00> : vector<16x128xf32>
    %19 = tpu.matmul %16, %18, %cst_12 {dimension_numbers = #tpu.dot_dimension_numbers<[1], [0], [0], [1], [0, 0, 1, 1], [], []>} : vector<16x128xf32>, vector<128x128xf32>, vector<16x128xf32> -> vector<16x128xf32>
    %20 = arith.addf %17, %19 : vector<16x128xf32>
    %c0_13 = arith.constant 0 : index
    %c0_14 = arith.constant 0 : index
    %21 = vector.load %arg11[%c0_13, %c0_14] : memref<16x128xf32, #tpu.memory_space<vmem>>, vector<16x128xf32>
    tpu.vector_store %arg11[%c0_13, %c0_14], %20 {strides = array<i32>} : memref<16x128xf32, #tpu.memory_space<vmem>>, vector<16x128xf32>,
    %c0_i32_15 = arith.constant 0 : i32
    %22 = arith.cmpi eq, %arg1, %c0_i32_15 : i32
    %23 = arith.extui %22 : i1 to i32
    %c0_i32_16 = arith.constant 0 : i32
    %24 = arith.cmpi ne, %23, %c0_i32_16 : i32
    scf.if %24 {
      %c0_17 = arith.constant 0 : index
      %c0_18 = arith.constant 0 : index
      %25 = vector.load %arg11[%c0_17, %c0_18] : memref<16x128xf32, #tpu.memory_space<vmem>>, vector<16x128xf32>
      %c0_19 = arith.constant 0 : index
      %c0_20 = arith.constant 0 : index
      %26 = vector.load %arg6[%c0_19, %c0_20] : memref<1x128xf32, #tpu.memory_space<vmem>>, vector<1x128xf32>
      %27 = vector.broadcast %26 : vector<1x128xf32> to vector<16x128xf32>
      %28 = arith.addf %25, %27 : vector<16x128xf32>
      %c0_21 = arith.constant 0 : index
      %c0_22 = arith.constant 0 : index
      %29 = vector.load %arg2[%c0_21, %c0_22] : memref<16x128xf32, #tpu.memory_space<vmem>>, vector<16x128xf32>
      %30 = arith.addf %28, %29 : vector<16x128xf32>
      %c0_23 = arith.constant 0 : index
      %c0_24 = arith.constant 0 : index
      %31 = vector.load %arg9[%c0_23, %c0_24] : memref<16x128xf32, #tpu.memory_space<vmem>>, vector<16x128xf32>
      tpu.vector_store %arg9[%c0_23, %c0_24], %30 {strides = array<i32>} : memref<16x128xf32, #tpu.memory_space<vmem>>, vector<16x128xf32>,
    } else {
    }
    return
  }
  func.func @transform_0(%arg0: i32, %arg1: i32) -> (i32, i32) {
    %c0_i32 = arith.constant 0 : i32
    %c0_i32_0 = arith.constant 0 : i32
    return %arg0, %c0_i32 : i32, i32
  }
  func.func @transform_1(%arg0: i32, %arg1: i32) -> (i32, i32) {
    %c0_i32 = arith.constant 0 : i32
    %c0_i32_0 = arith.constant 0 : i32
    return %c0_i32, %arg1 : i32, i32
  }
  func.func @transform_2(%arg0: i32, %arg1: i32) -> (i32, i32) {
    %c0_i32 = arith.constant 0 : i32
    %c0_i32_0 = arith.constant 0 : i32
    return %c0_i32, %arg1 : i32, i32
  }
  func.func @transform_3(%arg0: i32, %arg1: i32) -> (i32, i32) {
    %c0_i32 = arith.constant 0 : i32
    %c0_i32_0 = arith.constant 0 : i32
    return %arg1, %c0_i32 : i32, i32
  }
  func.func @transform_4(%arg0: i32, %arg1: i32) -> (i32, i32) {
    %c0_i32 = arith.constant 0 : i32
    %c0_i32_0 = arith.constant 0 : i32
    %c0_i32_1 = arith.constant 0 : i32
    return %c0_i32, %c0_i32_0 : i32, i32
  }
  func.func @transform_5(%arg0: i32, %arg1: i32) -> (i32, i32) {
    %c0_i32 = arith.constant 0 : i32
    %c0_i32_0 = arith.constant 0 : i32
    %c0_i32_1 = arith.constant 0 : i32
    return %c0_i32, %c0_i32_0 : i32, i32
  }
  func.func @transform_6(%arg0: i32, %arg1: i32) -> (i32, i32) {
    %c0_i32 = arith.constant 0 : i32
    %c0_i32_0 = arith.constant 0 : i32
    %c0_i32_1 = arith.constant 0 : i32
    return %c0_i32, %c0_i32_0 : i32, i32
  }
  func.func @transform_7(%arg0: i32, %arg1: i32) -> (i32, i32) {
    %c0_i32 = arith.constant 0 : i32
    %c0_i32_0 = arith.constant 0 : i32
    return %arg0, %c0_i32 : i32, i32
  }
}

module attributes {stable_mosaic.version = 11 : i64} {
  func.func @proj_layer_kernel(%arg0: i32, %arg1: i32, %arg2: memref<16x128xf32, #tpu.memory_space<vmem>>, %arg3: memref<128x128xf32, #tpu.memory_space<vmem>>, %arg4: memref<1x128xf32, #tpu.memory_space<vmem>>, %arg5: memref<128x128xf32, #tpu.memory_space<vmem>>, %arg6: memref<1x128xf32, #tpu.memory_space<vmem>>, %arg7: memref<1x128xf32, #tpu.memory_space<vmem>>, %arg8: memref<1x128xf32, #tpu.memory_space<vmem>>, %arg9: memref<16x128xf32, #tpu.memory_space<vmem>>, %arg10: memref<16x128xf32, #tpu.memory_space<vmem>>, %arg11: memref<16x128xf32, #tpu.memory_space<vmem>>) attributes {dimension_semantics = [#tpu.dimension_semantics<parallel>, #tpu.dimension_semantics<arbitrary>], iteration_bounds = array<i64: 1, 1>, scalar_prefetch = 0 : i64, scratch_operands = 2 : i64, tpu.core_type = #tpu.core_type<tc>, window_params = [{transform_indices = @transform_0, window_bounds = array<i64: 16, 128>}, {transform_indices = @transform_1, window_bounds = array<i64: 128, 128>}, {transform_indices = @transform_2, window_bounds = array<i64: 1, 128>}, {transform_indices = @transform_3, window_bounds = array<i64: 128, 128>}, {pipeline_mode = #tpu.pipeline_mode<synchronous>, transform_indices = @transform_4, window_bounds = array<i64: 1, 128>}, {pipeline_mode = #tpu.pipeline_mode<synchronous>, transform_indices = @transform_5, window_bounds = array<i64: 1, 128>}, {pipeline_mode = #tpu.pipeline_mode<synchronous>, transform_indices = @transform_6, window_bounds = array<i64: 1, 128>}, {transform_indices = @transform_7, window_bounds = array<i64: 16, 128>}]} {
    %c0_i32 = arith.constant 0 : i32
    %0 = arith.cmpi eq, %arg1, %c0_i32 : i32
    %1 = arith.extui %0 : i1 to i32
    %c0_i32_0 = arith.constant 0 : i32
    %2 = arith.cmpi ne, %1, %c0_i32_0 : i32
    scf.if %2 {
      %c0_17 = arith.constant 0 : index
      %c0_18 = arith.constant 0 : index
      %25 = vector.load %arg2[%c0_17, %c0_18] : memref<16x128xf32, #tpu.memory_space<vmem>>, vector<16x128xf32>
      %cst_19 = arith.constant dense<0.000000e+00> : vector<16xf32>
      %26 = vector.multi_reduction <add>, %25, %cst_19 [1] : vector<16x128xf32> to vector<16xf32>
      %27 = vector.shape_cast %26 : vector<16xf32> to vector<16x1xf32>
      %28 = arith.mulf %25, %25 : vector<16x128xf32>
      %cst_20 = arith.constant dense<0.000000e+00> : vector<16xf32>
      %29 = vector.multi_reduction <add>, %28, %cst_20 [1] : vector<16x128xf32> to vector<16xf32>
      %30 = vector.shape_cast %29 : vector<16xf32> to vector<16x1xf32>
      %cst_21 = arith.constant 3.125000e-02 : f32
      %31 = vector.broadcast %cst_21 : f32 to vector<16x1xf32>
      %32 = arith.mulf %27, %31 : vector<16x1xf32>
      %cst_22 = arith.constant 3.125000e-02 : f32
      %33 = vector.broadcast %cst_22 : f32 to vector<16x1xf32>
      %34 = arith.mulf %30, %33 : vector<16x1xf32>
      %35 = arith.mulf %32, %32 : vector<16x1xf32>
      %36 = arith.subf %34, %35 : vector<16x1xf32>
      %cst_23 = arith.constant 0.000000e+00 : f32
      %37 = vector.broadcast %cst_23 : f32 to vector<16x1xf32>
      %38 = arith.maximumf %36, %37 : vector<16x1xf32>
      %cst_24 = arith.constant 9.99999996E-13 : f32
      %39 = vector.broadcast %cst_24 : f32 to vector<16x1xf32>
      %40 = arith.addf %38, %39 : vector<16x1xf32>
      %41 = math.rsqrt %40 : vector<16x1xf32>
      %42 = vector.broadcast %32 : vector<16x1xf32> to vector<16x128xf32>
      %43 = arith.subf %25, %42 : vector<16x128xf32>
      %44 = vector.broadcast %41 : vector<16x1xf32> to vector<16x128xf32>
      %45 = arith.mulf %43, %44 : vector<16x128xf32>
      %c0_25 = arith.constant 0 : index
      %c0_26 = arith.constant 0 : index
      %46 = vector.load %arg7[%c0_25, %c0_26] : memref<1x128xf32, #tpu.memory_space<vmem>>, vector<1x128xf32>
      %47 = vector.broadcast %46 : vector<1x128xf32> to vector<16x128xf32>
      %48 = arith.mulf %45, %47 : vector<16x128xf32>
      %c0_27 = arith.constant 0 : index
      %c0_28 = arith.constant 0 : index
      %49 = vector.load %arg8[%c0_27, %c0_28] : memref<1x128xf32, #tpu.memory_space<vmem>>, vector<1x128xf32>
      %50 = vector.broadcast %49 : vector<1x128xf32> to vector<16x128xf32>
      %51 = arith.addf %48, %50 : vector<16x128xf32>
      %c0_29 = arith.constant 0 : index
      %c0_30 = arith.constant 0 : index
      %52 = vector.load %arg10[%c0_29, %c0_30] : memref<16x128xf32, #tpu.memory_space<vmem>>, vector<16x128xf32>
      tpu.vector_store %arg10[%c0_29, %c0_30], %51 {strides = array<i32>} : memref<16x128xf32, #tpu.memory_space<vmem>>, vector<16x128xf32>,
      %cst_31 = arith.constant 0.000000e+00 : f32
      %53 = vector.broadcast %cst_31 : f32 to vector<16x128xf32>
      %c0_32 = arith.constant 0 : index
      %c0_33 = arith.constant 0 : index
      %54 = vector.load %arg11[%c0_32, %c0_33] : memref<16x128xf32, #tpu.memory_space<vmem>>, vector<16x128xf32>
      tpu.vector_store %arg11[%c0_32, %c0_33], %53 {strides = array<i32>} : memref<16x128xf32, #tpu.memory_space<vmem>>, vector<16x128xf32>,
    } else {
    }
    %c0 = arith.constant 0 : index
    %c0_1 = arith.constant 0 : index
    %3 = vector.load %arg10[%c0, %c0_1] : memref<16x128xf32, #tpu.memory_space<vmem>>, vector<16x128xf32>
    %c0_2 = arith.constant 0 : index
    %c0_3 = arith.constant 0 : index
    %4 = vector.load %arg3[%c0_2, %c0_3] : memref<128x128xf32, #tpu.memory_space<vmem>>, vector<128x128xf32>
    %cst = arith.constant dense<0.000000e+00> : vector<16x128xf32>
    %5 = tpu.matmul %3, %4, %cst {dimension_numbers = #tpu.dot_dimension_numbers<[1], [0], [0], [1], [0, 0, 1, 1], [], []>} : vector<16x128xf32>, vector<128x128xf32>, vector<16x128xf32> -> vector<16x128xf32>
    %c0_4 = arith.constant 0 : index
    %c0_5 = arith.constant 0 : index
    %6 = vector.load %arg4[%c0_4, %c0_5] : memref<1x128xf32, #tpu.memory_space<vmem>>, vector<1x128xf32>
    %7 = vector.broadcast %6 : vector<1x128xf32> to vector<16x128xf32>
    %8 = arith.addf %5, %7 : vector<16x128xf32>
    %cst_6 = arith.constant 1.702000e+00 : f32
    %9 = vector.broadcast %cst_6 : f32 to vector<16x128xf32>
    %10 = arith.mulf %9, %8 : vector<16x128xf32>
    %11 = arith.negf %10 : vector<16x128xf32>
    %12 = math.exp %11 : vector<16x128xf32>
    %cst_7 = arith.constant 1.000000e+00 : f32
    %13 = vector.broadcast %cst_7 : f32 to vector<16x128xf32>
    %14 = arith.addf %13, %12 : vector<16x128xf32>
    %15 = arith.divf %13, %14 : vector<16x128xf32>
    %16 = arith.mulf %8, %15 : vector<16x128xf32>
    %c0_8 = arith.constant 0 : index
    %c0_9 = arith.constant 0 : index
    %17 = vector.load %arg11[%c0_8, %c0_9] : memref<16x128xf32, #tpu.memory_space<vmem>>, vector<16x128xf32>
    %c0_10 = arith.constant 0 : index
    %c0_11 = arith.constant 0 : index
    %18 = vector.load %arg5[%c0_10, %c0_11] : memref<128x128xf32, #tpu.memory_space<vmem>>, vector<128x128xf32>
    %cst_12 = arith.constant dense<0.000000e+00> : vector<16x128xf32>
    %19 = tpu.matmul %16, %18, %cst_12 {dimension_numbers = #tpu.dot_dimension_numbers<[1], [0], [0], [1], [0, 0, 1, 1], [], []>} : vector<16x128xf32>, vector<128x128xf32>, vector<16x128xf32> -> vector<16x128xf32>
    %20 = arith.addf %17, %19 : vector<16x128xf32>
    %c0_13 = arith.constant 0 : index
    %c0_14 = arith.constant 0 : index
    %21 = vector.load %arg11[%c0_13, %c0_14] : memref<16x128xf32, #tpu.memory_space<vmem>>, vector<16x128xf32>
    tpu.vector_store %arg11[%c0_13, %c0_14], %20 {strides = array<i32>} : memref<16x128xf32, #tpu.memory_space<vmem>>, vector<16x128xf32>,
    %c0_i32_15 = arith.constant 0 : i32
    %22 = arith.cmpi eq, %arg1, %c0_i32_15 : i32
    %23 = arith.extui %22 : i1 to i32
    %c0_i32_16 = arith.constant 0 : i32
    %24 = arith.cmpi ne, %23, %c0_i32_16 : i32
    scf.if %24 {
      %c0_17 = arith.constant 0 : index
      %c0_18 = arith.constant 0 : index
      %25 = vector.load %arg11[%c0_17, %c0_18] : memref<16x128xf32, #tpu.memory_space<vmem>>, vector<16x128xf32>
      %c0_19 = arith.constant 0 : index
      %c0_20 = arith.constant 0 : index
      %26 = vector.load %arg6[%c0_19, %c0_20] : memref<1x128xf32, #tpu.memory_space<vmem>>, vector<1x128xf32>
      %27 = vector.broadcast %26 : vector<1x128xf32> to vector<16x128xf32>
      %28 = arith.addf %25, %27 : vector<16x128xf32>
      %c0_21 = arith.constant 0 : index
      %c0_22 = arith.constant 0 : index
      %29 = vector.load %arg2[%c0_21, %c0_22] : memref<16x128xf32, #tpu.memory_space<vmem>>, vector<16x128xf32>
      %30 = arith.addf %28, %29 : vector<16x128xf32>
      %c0_23 = arith.constant 0 : index
      %c0_24 = arith.constant 0 : index
      %31 = vector.load %arg9[%c0_23, %c0_24] : memref<16x128xf32, #tpu.memory_space<vmem>>, vector<16x128xf32>
      tpu.vector_store %arg9[%c0_23, %c0_24], %30 {strides = array<i32>} : memref<16x128xf32, #tpu.memory_space<vmem>>, vector<16x128xf32>,
    } else {
    }
    return
  }
  func.func @transform_0(%arg0: i32, %arg1: i32) -> (i32, i32) {
    %c0_i32 = arith.constant 0 : i32
    %c0_i32_0 = arith.constant 0 : i32
    return %arg0, %c0_i32 : i32, i32
  }
  func.func @transform_1(%arg0: i32, %arg1: i32) -> (i32, i32) {
    %c0_i32 = arith.constant 0 : i32
    %c0_i32_0 = arith.constant 0 : i32
    return %c0_i32, %arg1 : i32, i32
  }
  func.func @transform_2(%arg0: i32, %arg1: i32) -> (i32, i32) {
    %c0_i32 = arith.constant 0 : i32
    %c0_i32_0 = arith.constant 0 : i32
    return %c0_i32, %arg1 : i32, i32
  }
  func.func @transform_3(%arg0: i32, %arg1: i32) -> (i32, i32) {
    %c0_i32 = arith.constant 0 : i32
    %c0_i32_0 = arith.constant 0 : i32
    return %arg1, %c0_i32 : i32, i32
  }
  func.func @transform_4(%arg0: i32, %arg1: i32) -> (i32, i32) {
    %c0_i32 = arith.constant 0 : i32
    %c0_i32_0 = arith.constant 0 : i32
    %c0_i32_1 = arith.constant 0 : i32
    return %c0_i32, %c0_i32_0 : i32, i32
  }
  func.func @transform_5(%arg0: i32, %arg1: i32) -> (i32, i32) {
    %c0_i32 = arith.constant 0 : i32
    %c0_i32_0 = arith.constant 0 : i32
    %c0_i32_1 = arith.constant 0 : i32
    return %c0_i32, %c0_i32_0 : i32, i32
  }
  func.func @transform_6(%arg0: i32, %arg1: i32) -> (i32, i32) {
    %c0_i32 = arith.constant 0 : i32
    %c0_i32_0 = arith.constant 0 : i32
    %c0_i32_1 = arith.constant 0 : i32
    return %c0_i32, %c0_i32_0 : i32, i32
  }
  func.func @transform_7(%arg0: i32, %arg1: i32) -> (i32, i32) {
    %c0_i32 = arith.constant 0 : i32
    %c0_i32_0 = arith.constant 0 : i32
    return %arg0, %c0_i32 : i32, i32
  }
}

</mosaic_0001>

<bundles_post_ra>
// kernel: tpu_custom_call.1
= control target key start
LH: loop header
LB: loop body
LE: loop exit
PB: predicated region body
PF: predicated region fallthrough
CT: control target
= control target key end

     0   :  { %12 = vsyncpa [#allocation5], 0  ;;  %s565_s0 = inlined_call_operand.hbm [shape: f32[16,128], index: 0, kind: input, shape index: {}]   ;;  %s566_s1 = inlined_call_operand.hbm [shape: f32[128,128], index: 1, kind: input, shape index: {}]   ;;  %s567_s2 = inlined_call_operand.vmem [shape: f32[1,128], index: 2, kind: input, shape index: {}]   ;;  %s568_s3 = inlined_call_operand.hbm [shape: f32[128,128], index: 3, kind: input, shape index: {}]   ;;  %s569_s4 = inlined_call_operand.vmem [shape: f32[1,128], index: 4, kind: input, shape index: {}]   ;;  %s570_s5 = inlined_call_operand.vmem [shape: f32[1,128], index: 5, kind: input, shape index: {}]   ;;  %s571_s6 = inlined_call_operand.vmem [shape: f32[1,128], index: 6, kind: input, shape index: {}]   ;;  %s572_s7 = inlined_call_operand.hbm [shape: f32[16,128], index: 7, kind: output, shape index: {}]  }
   0x1   :  { %13 = vsyncpa [#allocation8], 0 }
   0x2   :  { %14 = vsyncpa [#allocation6], 0  ;;  %s32_s26 = sshll.u32 %s566_s1, 4  ;;  %s469_s27 = smov [#allocation7]   ;;  %s33_s26 = int_to_ptr.hbm [resolvable:$true] %s32_s26 }
   0x3   :  { %s34_s28 = sshll.u32 %s469_s27, 4  ;;  %s19_s8 = sshll.u32 %s565_s0, 4  ;;  %s35_s28 = int_to_ptr.vmem [resolvable:$true] %s34_s28  ;;  %s20_s8 = int_to_ptr.hbm [resolvable:$true] %s19_s8 }
   0x4   :  { %s470_s9 = smov 128   ;;  %s471_s10 = smov 8  }
   0x5   :  { %40 = dma.hbm_to_vmem [thread:$0]  %s33_s26, 2048, %s35_s28, [#allocation8], %s470_s9, %s470_s9, %s471_s10  }
   0x6   :  { %s472_s11 = smov [#allocation4]   ;;  %s47_s1 = sshll.u32 %s568_s3, 4  ;;  %s48_s1 = int_to_ptr.hbm [resolvable:$true] %s47_s1 }
   0x7   :  { %s21_s12 = sshll.u32 %s472_s11, 4  ;;  %s473_s0 = smov [#allocation9]   ;;  %s22_s12 = int_to_ptr.vmem [resolvable:$true] %s21_s12 }
   0x8   :  { %27 = dma.hbm_to_vmem [thread:$0]  %s20_s8, 256, %s22_s12, [#allocation5], %s470_s9, %s470_s9, %s471_s10  }
   0x9   :  { %s49_s15 = sshll.u32 %s473_s0, 4  ;;  %s50_s15 = int_to_ptr.vmem [resolvable:$true] %s49_s15 }
   0xa   :  { %55 = dma.hbm_to_vmem [thread:$0]  %s48_s1, 2048, %s50_s15, [#allocation8], %s470_s9, %s470_s9, %s471_s10  }
   0xb   :  { %463 = dma.done.wait [#allocation5], 256  }
   0xc   :  { %464 = vsyncadd [#allocation5], 4294967040 }
   0xd   :  { %465 = dma.done.wait [#allocation8], 4096  }
   0xe   :  { %466 = vsyncadd [#allocation8], 4294963200  ;;  %v533_v0 = vld [vmem:[#allocation4 + $0x8] sm:$0xff]  ;;  %v535_v1 = vld [vmem:[#allocation4] sm:$0xff]  ;;  %s474_s20 = smov [#allocation10]   ;;  %s297_s24 = sshll.u32 %s572_s7, 4  ;;  %s298_s24 = int_to_ptr.hbm [resolvable:$true] %s297_s24 }
   0xf   :  { %82 = vadd.xlane.f32.xlu0 %v533_v0  ;;  %80 = vadd.xlane.f32.xlu1 %v535_v1  ;;  %v85_v2 = vmul.f32 %v533_v0, %v533_v0  ;;  %v84_v3 = vmul.f32 %v535_v1, %v535_v1  ;;  %v159_v4 = vld [vmem:[#allocation7 + $0x78] sm:$0xff]  ;;  %v158_v5 = vld [vmem:[#allocation7 + $0x70] sm:$0xff]  ;;  %v157_v6 = vld [vmem:[#allocation7 + $0x68] sm:$0xff]  ;;  %s295_s21 = sshll.u32 %s474_s20, 4  ;;  %s296_s21 = int_to_ptr.vmem [resolvable:$true] %s295_s21 }
  0x10   :  { %164 = vmatpush.msra.mxu0 %v159_v4  ;;  %313 = vmatpush.msra.mxu2 %v159_v4  ;;  %v156_v7 = vld [vmem:[#allocation7 + $0x60] sm:$0xff]  ;;  %v155_v8 = vld [vmem:[#allocation7 + $0x58] sm:$0xff]  ;;  %v154_v9 = vld [vmem:[#allocation7 + $0x50] sm:$0xff] }
  0x11   :  { %v153_v10 = vld [vmem:[#allocation7 + $0x48] sm:$0xff]  ;;  %v152_v11 = vld [vmem:[#allocation7 + $0x40] sm:$0xff]  ;;  %v151_v12 = vld [vmem:[#allocation7 + $0x38] sm:$0xff] }
  0x12   :  { %165 = vmatpush.msra.mxu0 %v158_v5  ;;  %314 = vmatpush.msra.mxu2 %v158_v5  ;;  %v150_v13 = vld [vmem:[#allocation7 + $0x30] sm:$0xff]  ;;  %v149_v14 = vld [vmem:[#allocation7 + $0x28] sm:$0xff]  ;;  %v148_v15 = vld [vmem:[#allocation7 + $0x20] sm:$0xff] }
  0x13   :  { %v147_v18 = vld [vmem:[#allocation7 + $0x18] sm:$0xff]  ;;  %v146_v19 = vld [vmem:[#allocation7 + $0x10] sm:$0xff]  ;;  %v145_v21 = vld [vmem:[#allocation7 + $0x8] sm:$0xff] }
  0x14   :  { %166 = vmatpush.msra.mxu0 %v157_v6  ;;  %315 = vmatpush.msra.mxu2 %v157_v6  ;;  %v144_v23 = vld [vmem:[#allocation7] sm:$0xff]  ;;  %v351_v49 = vld [vmem:[%s570_s5] ss:$0 sm:$0xff]  ;;  %v246_v60 = vld [vmem:[#allocation9 + $0x78] sm:$0xff] }
  0x15   :  { %v352_v53 = vld [vmem:[%s571_s6] ss:$0 sm:$0xff]  ;;  %247 = vmatpush.msra.mxu1 %v246_v60  ;;  %329 = vmatpush.msra.mxu3 %v246_v60  ;;  %v244_v62 = vld [vmem:[#allocation9 + $0x68] sm:$0xff]  ;;  %v243_v63 = vld [vmem:[#allocation9 + $0x60] sm:$0xff] }
  0x16   :  { %167 = vmatpush.msra.mxu0 %v156_v7  ;;  %316 = vmatpush.msra.mxu2 %v156_v7  ;;  %v245_v61 = vld [vmem:[#allocation9 + $0x70] sm:$0xff]  ;;  %v240_v4 = vld [vmem:[#allocation9 + $0x48] sm:$0xff]  ;;  %v239_v5 = vld [vmem:[#allocation9 + $0x40] sm:$0xff] }
  0x17   :  { %88 = vadd.xlane.f32.xlu0 %v85_v2  ;;  %86 = vadd.xlane.f32.xlu1 %v84_v3  ;;  %v242_v2 = vld [vmem:[#allocation9 + $0x58] sm:$0xff]  ;;  %v241_v3 = vld [vmem:[#allocation9 + $0x50] sm:$0xff] }
  0x18   :  { %168 = vmatpush.msra.mxu0 %v155_v8  ;;  %317 = vmatpush.msra.mxu2 %v155_v8  ;;  %v238_v6 = vld [vmem:[#allocation9 + $0x38] sm:$0xff]  ;;  %v237_v7 = vld [vmem:[#allocation9 + $0x30] sm:$0xff]  ;;  %v236_v8 = vld [vmem:[#allocation9 + $0x28] sm:$0xff] }
  0x19   :  { %248 = vmatpush.msra.mxu1 %v245_v61  ;;  %330 = vmatpush.msra.mxu3 %v245_v61 }
  0x1a   :  { %169 = vmatpush.msra.mxu0 %v154_v9  ;;  %318 = vmatpush.msra.mxu2 %v154_v9  ;;  %v235_v9 = vld [vmem:[#allocation9 + $0x20] sm:$0xff] }
  0x1b   :  { %249 = vmatpush.msra.mxu1 %v244_v62  ;;  %331 = vmatpush.msra.mxu3 %v244_v62 }
  0x1c   :  { %170 = vmatpush.msra.mxu0 %v153_v10  ;;  %319 = vmatpush.msra.mxu2 %v153_v10  ;;  %v234_v10 = vld [vmem:[#allocation9 + $0x18] sm:$0xff] }
  0x1d   :  { %250 = vmatpush.msra.mxu1 %v243_v63  ;;  %332 = vmatpush.msra.mxu3 %v243_v63 }
  0x1e   :  { %171 = vmatpush.msra.mxu0 %v152_v11  ;;  %320 = vmatpush.msra.mxu2 %v152_v11  ;;  %v233_v11 = vld [vmem:[#allocation9 + $0x10] sm:$0xff] }
  0x1f   :  { %251 = vmatpush.msra.mxu1 %v242_v2  ;;  %333 = vmatpush.msra.mxu3 %v242_v2 }
  0x20   :  { %172 = vmatpush.msra.mxu0 %v151_v12  ;;  %321 = vmatpush.msra.mxu2 %v151_v12  ;;  %v353_v12 = vld [vmem:[%s567_s2] ss:$0 sm:$0xff] }
  0x21   :  { %252 = vmatpush.msra.mxu1 %v241_v3  ;;  %334 = vmatpush.msra.mxu3 %v241_v3 }
  0x22   :  { %173 = vmatpush.msra.mxu0 %v150_v13  ;;  %322 = vmatpush.msra.mxu2 %v150_v13  ;;  %v232_v13 = vld [vmem:[#allocation9 + $0x8] sm:$0xff] }
  0x23   :  { %253 = vmatpush.msra.mxu1 %v240_v4  ;;  %335 = vmatpush.msra.mxu3 %v240_v4 }
  0x24   :  { %174 = vmatpush.msra.mxu0 %v149_v14  ;;  %323 = vmatpush.msra.mxu2 %v149_v14  ;;  %v231_v14 = vld [vmem:[#allocation9] sm:$0xff] }
  0x25   :  { %254 = vmatpush.msra.mxu1 %v239_v5  ;;  %336 = vmatpush.msra.mxu3 %v239_v5 }
  0x26   :  { %175 = vmatpush.msra.mxu0 %v148_v15  ;;  %324 = vmatpush.msra.mxu2 %v148_v15 }
  0x27   :  { %255 = vmatpush.msra.mxu1 %v238_v6  ;;  %337 = vmatpush.msra.mxu3 %v238_v6 }
  0x28   :  { %176 = vmatpush.msra.mxu0 %v147_v18  ;;  %325 = vmatpush.msra.mxu2 %v147_v18 }
  0x29   :  { %256 = vmatpush.msra.mxu1 %v237_v7  ;;  %338 = vmatpush.msra.mxu3 %v237_v7 }
  0x2a   :  { %177 = vmatpush.msra.mxu0 %v146_v19  ;;  %326 = vmatpush.msra.mxu2 %v146_v19 }
  0x2b   :  { %257 = vmatpush.msra.mxu1 %v236_v8  ;;  %339 = vmatpush.msra.mxu3 %v236_v8 }
  0x2c   :  { %178 = vmatpush.msra.mxu0 %v145_v21  ;;  %327 = vmatpush.msra.mxu2 %v145_v21 }
  0x2d   :  { %258 = vmatpush.msra.mxu1 %v235_v9  ;;  %340 = vmatpush.msra.mxu3 %v235_v9 }
  0x2e   :  { %179 = vmatpush.msra.mxu0 %v144_v23  ;;  %328 = vmatpush.msra.mxu2 %v144_v23 }
  0x2f   :  { %259 = vmatpush.msra.mxu1 %v234_v10  ;;  %341 = vmatpush.msra.mxu3 %v234_v10 }
  0x31   :  { %260 = vmatpush.msra.mxu1 %v233_v11  ;;  %342 = vmatpush.msra.mxu3 %v233_v11 }
  0x33   :  { %261 = vmatpush.msra.mxu1 %v232_v13  ;;  %343 = vmatpush.msra.mxu3 %v232_v13 }
  0x35   :  { %262 = vmatpush.msra.mxu1 %v231_v14  ;;  %344 = vmatpush.msra.mxu3 %v231_v14 }
  0x82   :  { %v83_v16 = vpop.xlane.xlu0 %82  ;;  %v81_v17 = vpop.xlane.xlu1 %80 }
  0x83   :  { %v90_v20 = vmul.f32 0.03125, %v81_v17  ;;  %v91_v22 = vmul.f32 0.03125, %v83_v16 }
  0x85   :  { %v94_v24 = vmul.f32 %v90_v20, %v90_v20  ;;  %v95_v27 = vmul.f32 %v91_v22, %v91_v22  ;;  %v123_v47 = vsub.f32 %v533_v0, %v91_v22  ;;  %v122_v50 = vsub.f32 %v535_v1, %v90_v20 }
  0x8a   :  { %v89_v25 = vpop.xlane.xlu0 %88  ;;  %v87_v26 = vpop.xlane.xlu1 %86 }
  0x8b   :  { %v93_v28 = vmul.f32 0.03125, %v89_v25  ;;  %v92_v29 = vmul.f32 0.03125, %v87_v26 }
  0x8d   :  { %v97_v30 = vsub.f32 %v93_v28, %v95_v27  ;;  %v96_v31 = vsub.f32 %v92_v29, %v94_v24 }
  0x8f   :  { %v99_v32 = vmax.f32 %v97_v30, 0.0  ;;  %v98_v33 = vmax.f32 %v96_v31, 0.0 }
  0x91   :  { %v101_v34 = vadd.f32 1e-12, %v99_v32  ;;  %v100_v35 = vadd.f32 1e-12, %v98_v33 }
  0x93   :  { %355 = vrsqrt.f32 %v101_v34  ;;  %vm108_vm1 = vweird.f32 %v100_v35  ;;  %vm118_vm3 = vweird.f32 %v101_v34 }
  0x94   :  { %357 = vrsqrt.f32 %v100_v35 }
  0x99   :  { %v356_v36 = vpop.eup %355 }
  0x9a   :  { %v358_v37 = vpop.eup %357  ;;  %v113_v38 = vmul.f32 %v356_v36, %v101_v34  ;;  %vm119_vm0 = vweird.f32 %v356_v36 }
  0x9b   :  { %v103_v39 = vmul.f32 %v358_v37, %v100_v35  ;;  %vm109_vm2 = vweird.f32 %v358_v37  ;;  %vm120_vm4 = vmor %vm118_vm3, %vm119_vm0 }
  0x9c   :  { %v114_v40 = vmul.f32 %v356_v36, %v113_v38  ;;  %vm110_vm5 = vmor %vm108_vm1, %vm109_vm2 }
  0x9d   :  { %v104_v41 = vmul.f32 %v358_v37, %v103_v39 }
  0x9e   :  { %v115_v42 = vmul.f32 0.5, %v114_v40 }
  0x9f   :  { %v105_v43 = vmul.f32 0.5, %v104_v41 }
  0xa0   :  { %v116_v44 = vsub.f32 1.5, %v115_v42 }
  0xa1   :  { %v106_v45 = vsub.f32 1.5, %v105_v43 }
  0xa2   :  { %v117_v46 = vmul.f32 %v356_v36, %v116_v44 }
  0xa3   :  { %v107_v48 = vmul.f32 %v358_v37, %v106_v45 }
  0xa4   :  { %v121_v51 = vsel %vm120_vm4, %v356_v36, %v117_v46 }
  0xa5   :  { %v111_v52 = vsel %vm110_vm5, %v358_v37, %v107_v48  ;;  %v125_v54 = vmul.f32 %v123_v47, %v121_v51 }
  0xa6   :  { %v124_v55 = vmul.f32 %v122_v50, %v111_v52 }
  0xa7   :  { %v131_v56 = vmul.f32 %v351_v49, %v125_v54 }
  0xa8   :  { %v130_v57 = vmul.f32 %v351_v49, %v124_v55  ;;  %v354_v49 = vld [vmem:[%s569_s4] ss:$0 sm:$0xff] }
  0xa9   :  { %v137_v58 = vadd.f32 %v352_v53, %v131_v56 }
  0xaa   :  { %v136_v59 = vadd.f32 %v352_v53, %v130_v57 }
  0xab   :  { %183 = vmatmul.f32.vlgmr.msra.gmra.mxu2 %v137_v58 }
  0xac   :  { %180 = vmatmul.f32.vlgmr.msra.gmra.mxu0 %v136_v59 }
 0x129   :  { %v181_v15 = vpop.f32.mrf.mxu0 }
 0x12a   :  { %v182_v16 = vadd.f32 %v353_v12, %v181_v15 }
 0x12c   :  { %v311_v17 = vmul.f32 -1.702, %v182_v16 }
 0x12e   :  { %v191_v18 = vmul.f32 1.442695, %v311_v17  ;;  %v184_v19 = vpop.f32.mrf.mxu2 }
 0x12f   :  { %v185_v20 = vadd.f32 %v353_v12, %v184_v19 }
 0x130   :  { %359 = vpow2.f32 %v191_v18 }
 0x131   :  { %v312_v21 = vmul.f32 -1.702, %v185_v20 }
 0x133   :  { %v193_v22 = vmul.f32 1.442695, %v312_v21 }
 0x135   :  { %361 = vpow2.f32 %v193_v22 }
 0x136   :  { %v360_v23 = vpop.eup %359 }
 0x137   :  { %v195_v24 = vadd.f32 1.0, %v360_v23 }
 0x139   :  { %363 = vrcp.f32 %v195_v24  ;;  %v208_v30 = vand.u32 2147483648, %v195_v24  ;;  %v206_v33 = vand.u32 2147483647, %v195_v24  ;;  %vm202_vm7 = vweird.f32 %v195_v24 }
 0x13b   :  { %v362_v25 = vpop.eup %361  ;;  %v209_v36 = vor.u32 1.1754944e-38, %v208_v30  ;;  %vm207_vm9 = vcmp.eq.f32.partialorder %v206_v33, 8.507059e+37 }
 0x13c   :  { %v196_v26 = vadd.f32 1.0, %v362_v25 }
 0x13e   :  { %365 = vrcp.f32 %v196_v26  ;;  %v223_v39 = vand.u32 2147483648, %v196_v26  ;;  %v221_v42 = vand.u32 2147483647, %v196_v26  ;;  %vm217_vm11 = vweird.f32 %v196_v26 }
 0x13f   :  { %v364_v27 = vpop.eup %363 }
 0x140   :  { %v198_v28 = vmul.f32 %v364_v27, %v195_v24  ;;  %vm203_vm6 = vweird.f32 %v364_v27  ;;  %v224_v45 = vor.u32 1.1754944e-38, %v223_v39  ;;  %vm222_vm13 = vcmp.eq.f32.partialorder %v221_v42, 8.507059e+37 }
 0x141   :  { %vm204_vm8 = vmor %vm202_vm7, %vm203_vm6 }
 0x142   :  { %v199_v29 = vsub.f32 1.0, %v198_v28 }
 0x144   :  { %v366_v31 = vpop.eup %365  ;;  %v200_v32 = vmul.f32 %v364_v27, %v199_v29 }
 0x145   :  { %v213_v34 = vmul.f32 %v366_v31, %v196_v26  ;;  %vm218_vm10 = vweird.f32 %v366_v31 }
 0x146   :  { %v201_v35 = vadd.f32 %v364_v27, %v200_v32  ;;  %vm219_vm12 = vmor %vm217_vm11, %vm218_vm10 }
 0x147   :  { %v214_v37 = vsub.f32 1.0, %v213_v34 }
 0x148   :  { %v205_v38 = vsel %vm204_vm8, %v364_v27, %v201_v35 }
 0x149   :  { %v210_v40 = vsel %vm207_vm9, %v209_v36, %v205_v38  ;;  %v215_v41 = vmul.f32 %v366_v31, %v214_v37 }
 0x14a   :  { %v227_v43 = vmul.f32 %v210_v40, %v182_v16 }
 0x14b   :  { %v216_v44 = vadd.f32 %v366_v31, %v215_v41 }
 0x14c   :  { %263 = vmatmul.f32.vlgmr.msra.gmra.mxu1 %v227_v43 }
 0x14d   :  { %v220_v46 = vsel %vm219_vm12, %v366_v31, %v216_v44 }
 0x14e   :  { %v225_v47 = vsel %vm222_vm13, %v224_v45, %v220_v46 }
 0x14f   :  { %v228_v48 = vmul.f32 %v225_v47, %v185_v20 }
 0x151   :  { %266 = vmatmul.f32.vlgmr.msra.gmra.mxu3 %v228_v48 }
 0x1c9   :  { %v264_v50 = vpop.f32.mrf.mxu1 }
 0x1ca   :  { %v283_v51 = vadd.f32 %v354_v49, %v264_v50 }
 0x1cc   :  { %v287_v52 = vadd.f32 %v283_v51, %v535_v1 }
 0x1ce   :  { %289 = vst [vmem:[#allocation10] sm:$0xff] %v287_v52 }
 0x1d4   :  { %v267_v53 = vpop.f32.mrf.mxu3 }
 0x1d5   :  { %v284_v54 = vadd.f32 %v354_v49, %v267_v53 }
 0x1d7   :  { %v288_v55 = vadd.f32 %v284_v54, %v533_v0 }
 0x1d9   :  { %290 = vst [vmem:[#allocation10 + $0x8] sm:$0xff] %v288_v55 }
 0x1da   :  { %303 = dma.vmem_to_hbm [thread:$0]  %s296_s21, 256, %s298_s24, [#allocation6], %s470_s9, %s470_s9, %s471_s10  }
 0x1db   :  { %467 = dma.done.wait [#allocation6], 256  }
 0x1dc   :  { %468 = vsyncadd [#allocation6], 4294967040 }
 0x1dd   :  { %308 = vsyncpa [#allocation5], 1 }
 0x1de   :  { %309 = vsyncpa [#allocation8], 1 }
 0x1df   :  { %310 = vsyncpa [#allocation6], 1 }

// kernel: tpu_custom_call.1
= control target key start
LH: loop header
LB: loop body
LE: loop exit
PB: predicated region body
PF: predicated region fallthrough
CT: control target
= control target key end

     0   :  { %12 = vsyncpa [#allocation5], 0  ;;  %s565_s0 = inlined_call_operand.hbm [shape: f32[16,128], index: 0, kind: input, shape index: {}]   ;;  %s566_s1 = inlined_call_operand.hbm [shape: f32[128,128], index: 1, kind: input, shape index: {}]   ;;  %s567_s2 = inlined_call_operand.vmem [shape: f32[1,128], index: 2, kind: input, shape index: {}]   ;;  %s568_s3 = inlined_call_operand.hbm [shape: f32[128,128], index: 3, kind: input, shape index: {}]   ;;  %s569_s4 = inlined_call_operand.vmem [shape: f32[1,128], index: 4, kind: input, shape index: {}]   ;;  %s570_s5 = inlined_call_operand.vmem [shape: f32[1,128], index: 5, kind: input, shape index: {}]   ;;  %s571_s6 = inlined_call_operand.vmem [shape: f32[1,128], index: 6, kind: input, shape index: {}]   ;;  %s572_s7 = inlined_call_operand.hbm [shape: f32[16,128], index: 7, kind: output, shape index: {}]  }
   0x1   :  { %13 = vsyncpa [#allocation8], 0 }
   0x2   :  { %14 = vsyncpa [#allocation6], 0  ;;  %s32_s26 = sshll.u32 %s566_s1, 4  ;;  %s469_s27 = smov [#allocation7]   ;;  %s33_s26 = int_to_ptr.hbm [resolvable:$true] %s32_s26 }
   0x3   :  { %s34_s28 = sshll.u32 %s469_s27, 4  ;;  %s19_s8 = sshll.u32 %s565_s0, 4  ;;  %s35_s28 = int_to_ptr.vmem [resolvable:$true] %s34_s28  ;;  %s20_s8 = int_to_ptr.hbm [resolvable:$true] %s19_s8 }
   0x4   :  { %s470_s9 = smov 128   ;;  %s471_s10 = smov 8  }
   0x5   :  { %40 = dma.hbm_to_vmem [thread:$0]  %s33_s26, 2048, %s35_s28, [#allocation8], %s470_s9, %s470_s9, %s471_s10  }
   0x6   :  { %s472_s11 = smov [#allocation4]   ;;  %s47_s1 = sshll.u32 %s568_s3, 4  ;;  %s48_s1 = int_to_ptr.hbm [resolvable:$true] %s47_s1 }
   0x7   :  { %s21_s12 = sshll.u32 %s472_s11, 4  ;;  %s473_s0 = smov [#allocation9]   ;;  %s22_s12 = int_to_ptr.vmem [resolvable:$true] %s21_s12 }
   0x8   :  { %27 = dma.hbm_to_vmem [thread:$0]  %s20_s8, 256, %s22_s12, [#allocation5], %s470_s9, %s470_s9, %s471_s10  }
   0x9   :  { %s49_s15 = sshll.u32 %s473_s0, 4  ;;  %s50_s15 = int_to_ptr.vmem [resolvable:$true] %s49_s15 }
   0xa   :  { %55 = dma.hbm_to_vmem [thread:$0]  %s48_s1, 2048, %s50_s15, [#allocation8], %s470_s9, %s470_s9, %s471_s10  }
   0xb   :  { %463 = dma.done.wait [#allocation5], 256  }
   0xc   :  { %464 = vsyncadd [#allocation5], 4294967040 }
   0xd   :  { %465 = dma.done.wait [#allocation8], 4096  }
   0xe   :  { %466 = vsyncadd [#allocation8], 4294963200  ;;  %v533_v0 = vld [vmem:[#allocation4 + $0x8] sm:$0xff]  ;;  %v535_v1 = vld [vmem:[#allocation4] sm:$0xff]  ;;  %s474_s20 = smov [#allocation10]   ;;  %s297_s24 = sshll.u32 %s572_s7, 4  ;;  %s298_s24 = int_to_ptr.hbm [resolvable:$true] %s297_s24 }
   0xf   :  { %82 = vadd.xlane.f32.xlu0 %v533_v0  ;;  %80 = vadd.xlane.f32.xlu1 %v535_v1  ;;  %v85_v2 = vmul.f32 %v533_v0, %v533_v0  ;;  %v84_v3 = vmul.f32 %v535_v1, %v535_v1  ;;  %v159_v4 = vld [vmem:[#allocation7 + $0x78] sm:$0xff]  ;;  %v158_v5 = vld [vmem:[#allocation7 + $0x70] sm:$0xff]  ;;  %v157_v6 = vld [vmem:[#allocation7 + $0x68] sm:$0xff]  ;;  %s295_s21 = sshll.u32 %s474_s20, 4  ;;  %s296_s21 = int_to_ptr.vmem [resolvable:$true] %s295_s21 }
  0x10   :  { %164 = vmatpush.msra.mxu0 %v159_v4  ;;  %313 = vmatpush.msra.mxu2 %v159_v4  ;;  %v156_v7 = vld [vmem:[#allocation7 + $0x60] sm:$0xff]  ;;  %v155_v8 = vld [vmem:[#allocation7 + $0x58] sm:$0xff]  ;;  %v154_v9 = vld [vmem:[#allocation7 + $0x50] sm:$0xff] }
  0x11   :  { %v153_v10 = vld [vmem:[#allocation7 + $0x48] sm:$0xff]  ;;  %v152_v11 = vld [vmem:[#allocation7 + $0x40] sm:$0xff]  ;;  %v151_v12 = vld [vmem:[#allocation7 + $0x38] sm:$0xff] }
  0x12   :  { %165 = vmatpush.msra.mxu0 %v158_v5  ;;  %314 = vmatpush.msra.mxu2 %v158_v5  ;;  %v150_v13 = vld [vmem:[#allocation7 + $0x30] sm:$0xff]  ;;  %v149_v14 = vld [vmem:[#allocation7 + $0x28] sm:$0xff]  ;;  %v148_v15 = vld [vmem:[#allocation7 + $0x20] sm:$0xff] }
  0x13   :  { %v147_v18 = vld [vmem:[#allocation7 + $0x18] sm:$0xff]  ;;  %v146_v19 = vld [vmem:[#allocation7 + $0x10] sm:$0xff]  ;;  %v145_v21 = vld [vmem:[#allocation7 + $0x8] sm:$0xff] }
  0x14   :  { %166 = vmatpush.msra.mxu0 %v157_v6  ;;  %315 = vmatpush.msra.mxu2 %v157_v6  ;;  %v144_v23 = vld [vmem:[#allocation7] sm:$0xff]  ;;  %v351_v49 = vld [vmem:[%s570_s5] ss:$0 sm:$0xff]  ;;  %v246_v60 = vld [vmem:[#allocation9 + $0x78] sm:$0xff] }
  0x15   :  { %v352_v53 = vld [vmem:[%s571_s6] ss:$0 sm:$0xff]  ;;  %247 = vmatpush.msra.mxu1 %v246_v60  ;;  %329 = vmatpush.msra.mxu3 %v246_v60  ;;  %v244_v62 = vld [vmem:[#allocation9 + $0x68] sm:$0xff]  ;;  %v243_v63 = vld [vmem:[#allocation9 + $0x60] sm:$0xff] }
  0x16   :  { %167 = vmatpush.msra.mxu0 %v156_v7  ;;  %316 = vmatpush.msra.mxu2 %v156_v7  ;;  %v245_v61 = vld [vmem:[#allocation9 + $0x70] sm:$0xff]  ;;  %v240_v4 = vld [vmem:[#allocation9 + $0x48] sm:$0xff]  ;;  %v239_v5 = vld [vmem:[#allocation9 + $0x40] sm:$0xff] }
  0x17   :  { %88 = vadd.xlane.f32.xlu0 %v85_v2  ;;  %86 = vadd.xlane.f32.xlu1 %v84_v3  ;;  %v242_v2 = vld [vmem:[#allocation9 + $0x58] sm:$0xff]  ;;  %v241_v3 = vld [vmem:[#allocation9 + $0x50] sm:$0xff] }
  0x18   :  { %168 = vmatpush.msra.mxu0 %v155_v8  ;;  %317 = vmatpush.msra.mxu2 %v155_v8  ;;  %v238_v6 = vld [vmem:[#allocation9 + $0x38] sm:$0xff]  ;;  %v237_v7 = vld [vmem:[#allocation9 + $0x30] sm:$0xff]  ;;  %v236_v8 = vld [vmem:[#allocation9 + $0x28] sm:$0xff] }
  0x19   :  { %248 = vmatpush.msra.mxu1 %v245_v61  ;;  %330 = vmatpush.msra.mxu3 %v245_v61 }
  0x1a   :  { %169 = vmatpush.msra.mxu0 %v154_v9  ;;  %318 = vmatpush.msra.mxu2 %v154_v9  ;;  %v235_v9 = vld [vmem:[#allocation9 + $0x20] sm:$0xff] }
  0x1b   :  { %249 = vmatpush.msra.mxu1 %v244_v62  ;;  %331 = vmatpush.msra.mxu3 %v244_v62 }
  0x1c   :  { %170 = vmatpush.msra.mxu0 %v153_v10  ;;  %319 = vmatpush.msra.mxu2 %v153_v10  ;;  %v234_v10 = vld [vmem:[#allocation9 + $0x18] sm:$0xff] }
  0x1d   :  { %250 = vmatpush.msra.mxu1 %v243_v63  ;;  %332 = vmatpush.msra.mxu3 %v243_v63 }
  0x1e   :  { %171 = vmatpush.msra.mxu0 %v152_v11  ;;  %320 = vmatpush.msra.mxu2 %v152_v11  ;;  %v233_v11 = vld [vmem:[#allocation9 + $0x10] sm:$0xff] }
  0x1f   :  { %251 = vmatpush.msra.mxu1 %v242_v2  ;;  %333 = vmatpush.msra.mxu3 %v242_v2 }
  0x20   :  { %172 = vmatpush.msra.mxu0 %v151_v12  ;;  %321 = vmatpush.msra.mxu2 %v151_v12  ;;  %v353_v12 = vld [vmem:[%s567_s2] ss:$0 sm:$0xff] }
  0x21   :  { %252 = vmatpush.msra.mxu1 %v241_v3  ;;  %334 = vmatpush.msra.mxu3 %v241_v3 }
  0x22   :  { %173 = vmatpush.msra.mxu0 %v150_v13  ;;  %322 = vmatpush.msra.mxu2 %v150_v13  ;;  %v232_v13 = vld [vmem:[#allocation9 + $0x8] sm:$0xff] }
  0x23   :  { %253 = vmatpush.msra.mxu1 %v240_v4  ;;  %335 = vmatpush.msra.mxu3 %v240_v4 }
  0x24   :  { %174 = vmatpush.msra.mxu0 %v149_v14  ;;  %323 = vmatpush.msra.mxu2 %v149_v14  ;;  %v231_v14 = vld [vmem:[#allocation9] sm:$0xff] }
  0x25   :  { %254 = vmatpush.msra.mxu1 %v239_v5  ;;  %336 = vmatpush.msra.mxu3 %v239_v5 }
  0x26   :  { %175 = vmatpush.msra.mxu0 %v148_v15  ;;  %324 = vmatpush.msra.mxu2 %v148_v15 }
  0x27   :  { %255 = vmatpush.msra.mxu1 %v238_v6  ;;  %337 = vmatpush.msra.mxu3 %v238_v6 }
  0x28   :  { %176 = vmatpush.msra.mxu0 %v147_v18  ;;  %325 = vmatpush.msra.mxu2 %v147_v18 }
  0x29   :  { %256 = vmatpush.msra.mxu1 %v237_v7  ;;  %338 = vmatpush.msra.mxu3 %v237_v7 }
  0x2a   :  { %177 = vmatpush.msra.mxu0 %v146_v19  ;;  %326 = vmatpush.msra.mxu2 %v146_v19 }
  0x2b   :  { %257 = vmatpush.msra.mxu1 %v236_v8  ;;  %339 = vmatpush.msra.mxu3 %v236_v8 }
  0x2c   :  { %178 = vmatpush.msra.mxu0 %v145_v21  ;;  %327 = vmatpush.msra.mxu2 %v145_v21 }
  0x2d   :  { %258 = vmatpush.msra.mxu1 %v235_v9  ;;  %340 = vmatpush.msra.mxu3 %v235_v9 }
  0x2e   :  { %179 = vmatpush.msra.mxu0 %v144_v23  ;;  %328 = vmatpush.msra.mxu2 %v144_v23 }
  0x2f   :  { %259 = vmatpush.msra.mxu1 %v234_v10  ;;  %341 = vmatpush.msra.mxu3 %v234_v10 }
  0x31   :  { %260 = vmatpush.msra.mxu1 %v233_v11  ;;  %342 = vmatpush.msra.mxu3 %v233_v11 }
  0x33   :  { %261 = vmatpush.msra.mxu1 %v232_v13  ;;  %343 = vmatpush.msra.mxu3 %v232_v13 }
  0x35   :  { %262 = vmatpush.msra.mxu1 %v231_v14  ;;  %344 = vmatpush.msra.mxu3 %v231_v14 }
  0x82   :  { %v83_v16 = vpop.xlane.xlu0 %82  ;;  %v81_v17 = vpop.xlane.xlu1 %80 }
  0x83   :  { %v90_v20 = vmul.f32 0.03125, %v81_v17  ;;  %v91_v22 = vmul.f32 0.03125, %v83_v16 }
  0x85   :  { %v94_v24 = vmul.f32 %v90_v20, %v90_v20  ;;  %v95_v27 = vmul.f32 %v91_v22, %v91_v22  ;;  %v123_v47 = vsub.f32 %v533_v0, %v91_v22  ;;  %v122_v50 = vsub.f32 %v535_v1, %v90_v20 }
  0x8a   :  { %v89_v25 = vpop.xlane.xlu0 %88  ;;  %v87_v26 = vpop.xlane.xlu1 %86 }
  0x8b   :  { %v93_v28 = vmul.f32 0.03125, %v89_v25  ;;  %v92_v29 = vmul.f32 0.03125, %v87_v26 }
  0x8d   :  { %v97_v30 = vsub.f32 %v93_v28, %v95_v27  ;;  %v96_v31 = vsub.f32 %v92_v29, %v94_v24 }
  0x8f   :  { %v99_v32 = vmax.f32 %v97_v30, 0.0  ;;  %v98_v33 = vmax.f32 %v96_v31, 0.0 }
  0x91   :  { %v101_v34 = vadd.f32 1e-12, %v99_v32  ;;  %v100_v35 = vadd.f32 1e-12, %v98_v33 }
  0x93   :  { %355 = vrsqrt.f32 %v101_v34  ;;  %vm108_vm1 = vweird.f32 %v100_v35  ;;  %vm118_vm3 = vweird.f32 %v101_v34 }
  0x94   :  { %357 = vrsqrt.f32 %v100_v35 }
  0x99   :  { %v356_v36 = vpop.eup %355 }
  0x9a   :  { %v358_v37 = vpop.eup %357  ;;  %v113_v38 = vmul.f32 %v356_v36, %v101_v34  ;;  %vm119_vm0 = vweird.f32 %v356_v36 }
  0x9b   :  { %v103_v39 = vmul.f32 %v358_v37, %v100_v35  ;;  %vm109_vm2 = vweird.f32 %v358_v37  ;;  %vm120_vm4 = vmor %vm118_vm3, %vm119_vm0 }
  0x9c   :  { %v114_v40 = vmul.f32 %v356_v36, %v113_v38  ;;  %vm110_vm5 = vmor %vm108_vm1, %vm109_vm2 }
  0x9d   :  { %v104_v41 = vmul.f32 %v358_v37, %v103_v39 }
  0x9e   :  { %v115_v42 = vmul.f32 0.5, %v114_v40 }
  0x9f   :  { %v105_v43 = vmul.f32 0.5, %v104_v41 }
  0xa0   :  { %v116_v44 = vsub.f32 1.5, %v115_v42 }
  0xa1   :  { %v106_v45 = vsub.f32 1.5, %v105_v43 }
  0xa2   :  { %v117_v46 = vmul.f32 %v356_v36, %v116_v44 }
  0xa3   :  { %v107_v48 = vmul.f32 %v358_v37, %v106_v45 }
  0xa4   :  { %v121_v51 = vsel %vm120_vm4, %v356_v36, %v117_v46 }
  0xa5   :  { %v111_v52 = vsel %vm110_vm5, %v358_v37, %v107_v48  ;;  %v125_v54 = vmul.f32 %v123_v47, %v121_v51 }
  0xa6   :  { %v124_v55 = vmul.f32 %v122_v50, %v111_v52 }
  0xa7   :  { %v131_v56 = vmul.f32 %v351_v49, %v125_v54 }
  0xa8   :  { %v130_v57 = vmul.f32 %v351_v49, %v124_v55  ;;  %v354_v49 = vld [vmem:[%s569_s4] ss:$0 sm:$0xff] }
  0xa9   :  { %v137_v58 = vadd.f32 %v352_v53, %v131_v56 }
  0xaa   :  { %v136_v59 = vadd.f32 %v352_v53, %v130_v57 }
  0xab   :  { %183 = vmatmul.f32.vlgmr.msra.gmra.mxu2 %v137_v58 }
  0xac   :  { %180 = vmatmul.f32.vlgmr.msra.gmra.mxu0 %v136_v59 }
 0x129   :  { %v181_v15 = vpop.f32.mrf.mxu0 }
 0x12a   :  { %v182_v16 = vadd.f32 %v353_v12, %v181_v15 }
 0x12c   :  { %v311_v17 = vmul.f32 -1.702, %v182_v16 }
 0x12e   :  { %v191_v18 = vmul.f32 1.442695, %v311_v17  ;;  %v184_v19 = vpop.f32.mrf.mxu2 }
 0x12f   :  { %v185_v20 = vadd.f32 %v353_v12, %v184_v19 }
 0x130   :  { %359 = vpow2.f32 %v191_v18 }
 0x131   :  { %v312_v21 = vmul.f32 -1.702, %v185_v20 }
 0x133   :  { %v193_v22 = vmul.f32 1.442695, %v312_v21 }
 0x135   :  { %361 = vpow2.f32 %v193_v22 }
 0x136   :  { %v360_v23 = vpop.eup %359 }
 0x137   :  { %v195_v24 = vadd.f32 1.0, %v360_v23 }
 0x139   :  { %363 = vrcp.f32 %v195_v24  ;;  %v208_v30 = vand.u32 2147483648, %v195_v24  ;;  %v206_v33 = vand.u32 2147483647, %v195_v24  ;;  %vm202_vm7 = vweird.f32 %v195_v24 }
 0x13b   :  { %v362_v25 = vpop.eup %361  ;;  %v209_v36 = vor.u32 1.1754944e-38, %v208_v30  ;;  %vm207_vm9 = vcmp.eq.f32.partialorder %v206_v33, 8.507059e+37 }
 0x13c   :  { %v196_v26 = vadd.f32 1.0, %v362_v25 }
 0x13e   :  { %365 = vrcp.f32 %v196_v26  ;;  %v223_v39 = vand.u32 2147483648, %v196_v26  ;;  %v221_v42 = vand.u32 2147483647, %v196_v26  ;;  %vm217_vm11 = vweird.f32 %v196_v26 }
 0x13f   :  { %v364_v27 = vpop.eup %363 }
 0x140   :  { %v198_v28 = vmul.f32 %v364_v27, %v195_v24  ;;  %vm203_vm6 = vweird.f32 %v364_v27  ;;  %v224_v45 = vor.u32 1.1754944e-38, %v223_v39  ;;  %vm222_vm13 = vcmp.eq.f32.partialorder %v221_v42, 8.507059e+37 }
 0x141   :  { %vm204_vm8 = vmor %vm202_vm7, %vm203_vm6 }
 0x142   :  { %v199_v29 = vsub.f32 1.0, %v198_v28 }
 0x144   :  { %v366_v31 = vpop.eup %365  ;;  %v200_v32 = vmul.f32 %v364_v27, %v199_v29 }
 0x145   :  { %v213_v34 = vmul.f32 %v366_v31, %v196_v26  ;;  %vm218_vm10 = vweird.f32 %v366_v31 }
 0x146   :  { %v201_v35 = vadd.f32 %v364_v27, %v200_v32  ;;  %vm219_vm12 = vmor %vm217_vm11, %vm218_vm10 }
 0x147   :  { %v214_v37 = vsub.f32 1.0, %v213_v34 }
 0x148   :  { %v205_v38 = vsel %vm204_vm8, %v364_v27, %v201_v35 }
 0x149   :  { %v210_v40 = vsel %vm207_vm9, %v209_v36, %v205_v38  ;;  %v215_v41 = vmul.f32 %v366_v31, %v214_v37 }
 0x14a   :  { %v227_v43 = vmul.f32 %v210_v40, %v182_v16 }
 0x14b   :  { %v216_v44 = vadd.f32 %v366_v31, %v215_v41 }
 0x14c   :  { %263 = vmatmul.f32.vlgmr.msra.gmra.mxu1 %v227_v43 }
 0x14d   :  { %v220_v46 = vsel %vm219_vm12, %v366_v31, %v216_v44 }
 0x14e   :  { %v225_v47 = vsel %vm222_vm13, %v224_v45, %v220_v46 }
 0x14f   :  { %v228_v48 = vmul.f32 %v225_v47, %v185_v20 }
 0x151   :  { %266 = vmatmul.f32.vlgmr.msra.gmra.mxu3 %v228_v48 }
 0x1c9   :  { %v264_v50 = vpop.f32.mrf.mxu1 }
 0x1ca   :  { %v283_v51 = vadd.f32 %v354_v49, %v264_v50 }
 0x1cc   :  { %v287_v52 = vadd.f32 %v283_v51, %v535_v1 }
 0x1ce   :  { %289 = vst [vmem:[#allocation10] sm:$0xff] %v287_v52 }
 0x1d4   :  { %v267_v53 = vpop.f32.mrf.mxu3 }
 0x1d5   :  { %v284_v54 = vadd.f32 %v354_v49, %v267_v53 }
 0x1d7   :  { %v288_v55 = vadd.f32 %v284_v54, %v533_v0 }
 0x1d9   :  { %290 = vst [vmem:[#allocation10 + $0x8] sm:$0xff] %v288_v55 }
 0x1da   :  { %303 = dma.vmem_to_hbm [thread:$0]  %s296_s21, 256, %s298_s24, [#allocation6], %s470_s9, %s470_s9, %s471_s10  }
 0x1db   :  { %467 = dma.done.wait [#allocation6], 256  }
 0x1dc   :  { %468 = vsyncadd [#allocation6], 4294967040 }
 0x1dd   :  { %308 = vsyncpa [#allocation5], 1 }
 0x1de   :  { %309 = vsyncpa [#allocation8], 1 }
 0x1df   :  { %310 = vsyncpa [#allocation6], 1 }

</bundles_post_ra>
